<compile_context>
chip_gen: v5e
topology: v5e:2x2
jax: 0.10.0
libtpu: 0.0.40
codegen_flags: <defaults>
</compile_context>

<pallas_src>
import functools
import math

import jax
import jax.numpy as jnp
from jax.experimental import pallas as pl
from jax.experimental.pallas import tpu as pltpu


def _deconv_kernel(x_ref, w_ref, b_ref, o_ref, xpad_ref, *, H, W, Kp, Wpad, QH):
    # x_ref:    (Cin, H*W)            compact NCHW input, flattened spatially
    # w_ref:    (s*s*Cout, Kp*Kp*Cin) phase/tap-stacked, eq-LR-scaled weights
    # b_ref:    (s*s*Cout, 1)         bias tiled per phase
    # o_ref:    (s*s*Cout, QH*Wpad)   per-phase outputs, row pitch = Wpad
    # xpad_ref: (Cin, Hpad*Wpad + Kp-1) VMEM scratch (padded input, flat)
    L = QH * Wpad

    # --- build the zero-padded input in VMEM (no dilation, no HBM pass) ------
    xpad_ref[...] = jnp.zeros_like(xpad_ref)
    for ih in range(H):                                   # static, H row copies
        dst = (Kp - 1 + ih) * Wpad + (Kp - 1)
        xpad_ref[:, dst:dst + W] = x_ref[:, ih * W:(ih + 1) * W]

    # --- tap-stacked RHS: Kp*Kp contiguous flat slices, concat on sublanes ---
    taps = [xpad_ref[:, uh * Wpad + uw: uh * Wpad + uw + L]
            for uh in range(Kp) for uw in range(Kp)]
    rhs = taps[0] if len(taps) == 1 else jnp.concatenate(taps, axis=0)

    # --- one lane-dense MXU matmul for all taps and all output phases --------
    acc = jnp.dot(w_ref[...], rhs, preferred_element_type=jnp.float32)

    # fused epilogue: bias broadcast along lanes, single full-width store
    o_ref[...] = (acc + b_ref[...]).astype(o_ref.dtype)


def equalized_deconv2d(x_nchw, weight, bias=None, *, stride=1, pad=0):
    """x_nchw: (N, Cin, H, W); weight: (Cin, Cout, K, K); bias: (Cout,) or None."""
    N, Cin, H, W = x_nchw.shape
    wcin, Cout, KH, KW = weight.shape
    assert wcin == Cin and KH == KW
    K, s, p = int(KH), int(stride), int(pad)
    scale = math.sqrt(2.0) / math.sqrt(Cin)

    OH = (H - 1) * s - 2 * p + K
    OW = (W - 1) * s - 2 * p + K
    assert OH >= 1 and OW >= 1

    Kp = -(-K // s)                    # taps per phase = ceil(K / s)
    Ke = Kp * s                        # zero-extended kernel (handles K % s != 0)
    QH, QW = H + Kp - 1, W + Kp - 1    # per-phase "full" (pad=0) output extent
    Hpad, Wpad = H + 2 * (Kp - 1), W + 2 * (Kp - 1)
    L = QH * Wpad                      # flat per-phase length (row pitch = Wpad)
    pad_len = Hpad * Wpad + (Kp - 1)   # + tail so every tap slice stays in-bounds
    S2C, KKC = s * s * Cout, Kp * Kp * Cin

    # ---- tiny parameter prep (a few KB, once per call) -----------------------
    w = weight.astype(jnp.float32) * scale                 # equalized learning rate
    if Ke != K:
        w = jnp.pad(w, ((0, 0), (0, 0), (0, Ke - K), (0, Ke - K)))
    # w6[ci, co, uh, rh, uw, rw] = w[ci, co, rh + s*(Kp-1-uh), rw + s*(Kp-1-uw)]
    w6 = w.reshape(Cin, Cout, Kp, s, Kp, s)[:, :, ::-1, :, ::-1, :]
    wcat = jnp.transpose(w6, (3, 5, 1, 2, 4, 0)).reshape(S2C, KKC)
    if bias is None:
        bcat = jnp.zeros((S2C, 1), jnp.float32)
    else:
        bcat = jnp.tile(bias.astype(jnp.float32), s * s).reshape(S2C, 1)

    # kernel consumes NCHW directly; collapsing (H, W) is a free reshape
    x_flat = x_nchw.astype(jnp.float32).reshape(N, Cin, H * W)

    kernel = functools.partial(_deconv_kernel, H=H, W=W, Kp=Kp, Wpad=Wpad, QH=QH)

    out_raw = pl.pallas_call(
        kernel,
        out_shape=jax.ShapeDtypeStruct((N, S2C, L), jnp.float32),
        grid_spec=pltpu.PrefetchScalarGridSpec(
            num_scalar_prefetch=0,
            grid=(N,),                                  # even-sized parallel axis
            in_specs=[
                pl.BlockSpec((None, Cin, H * W), lambda n: (n, 0, 0)),
                pl.BlockSpec((S2C, KKC), lambda n: (0, 0)),   # resident
                pl.BlockSpec((S2C, 1), lambda n: (0, 0)),     # resident
            ],
            out_specs=pl.BlockSpec((None, S2C, L), lambda n: (n, 0, 0)),
            scratch_shapes=[pltpu.VMEM((Cin, pad_len), jnp.float32)],
        ),
        compiler_params=pltpu.CompilerParams(
            dimension_semantics=("parallel",)),
    )(x_flat, wcat, bcat)

    # ---- phase de-interleave + crop: one tiny pass over (N, S2C, L) ----------
    yf = out_raw.reshape(N, s, s, Cout, QH, Wpad)[..., :QW]   # drop row-pitch slack
    yf = jnp.transpose(yf, (0, 3, 4, 1, 5, 2))                # (N,Cout,QH,s,QW,s)
    yf = yf.reshape(N, Cout, s * QH, s * QW)                  # interleave phases
    y = yf[:, :, p:p + OH, p:p + OW]                          # output padding crop
    return y.astype(x_nchw.dtype)


def _reference_deconv2d(x_nchw, weight, bias, *, stride, pad):
    """Independent scatter-form reference of F.conv_transpose2d (+ eq-LR scale)."""
    N, Cin, H, W = x_nchw.shape
    _, Cout, K, _ = weight.shape
    s = stride
    scale = math.sqrt(2.0) / math.sqrt(Cin)
    x = jnp.transpose(x_nchw, (0, 2, 3, 1)).astype(jnp.float32)   # NHWC
    full_h = (H - 1) * s + K
    full_w = (W - 1) * s + K
    full = jnp.zeros((N, full_h, full_w, Cout), jnp.float32)
    for kh in range(K):
        for kw in range(K):
            t = jnp.einsum('nhwc,cd->nhwd', x, weight[:, :, kh, kw] * scale)
            full = full.at[:, kh:kh + (H - 1) * s + 1:s,
                              kw:kw + (W - 1) * s + 1:s, :].add(t)
    out = full[:, pad:full_h - pad, pad:full_w - pad, :] + bias[None, None, None, :]
    return jnp.transpose(out, (0, 3, 1, 2))


if __name__ == "__main__":
    # Config 1: standard MSG-GAN 2x upsampling deconv: c_in=4, c_out=8,
    # k_size=4, stride=2, pad=1.  Input 16x16 -> output 32x32.
    key = jax.random.PRNGKey(0)
    kx, kw = jax.random.split(key)
    c_in, c_out, k_size, stride, pad = 4, 8, 4, 2, 1
    N, H, W = 2, 16, 16
    x = jax.random.normal(kx, (N, c_in, H, W), dtype=jnp.float32)
    weight = jax.random.normal(kw, (c_in, c_out, k_size, k_size), dtype=jnp.float32)
    bias = jnp.zeros((c_out,), dtype=jnp.float32)     # module inits bias to 0

    y = jax.block_until_ready(
        equalized_deconv2d(x, weight, bias, stride=stride, pad=pad))
    y_ref = _reference_deconv2d(x, weight, bias, stride=stride, pad=pad)
    assert y.shape == (N, c_out, 32, 32)
    assert jnp.allclose(y, y_ref, atol=2e-3, rtol=2e-3)

    # Config 2: general path (k % stride != 0, nonzero bias).
    kx2, kw2, kb2 = jax.random.split(jax.random.PRNGKey(1), 3)
    c2_in, c2_out, k2, s2, p2 = 4, 8, 3, 2, 1
    N2, H2, W2 = 2, 8, 8
    x2 = jax.random.normal(kx2, (N2, c2_in, H2, W2), dtype=jnp.float32)
    w2 = jax.random.normal(kw2, (c2_in, c2_out, k2, k2), dtype=jnp.float32)
    b2 = jax.random.normal(kb2, (c2_out,), dtype=jnp.float32)
    y2 = jax.block_until_ready(equalized_deconv2d(x2, w2, b2, stride=s2, pad=p2))
    y2_ref = _reference_deconv2d(x2, w2, b2, stride=s2, pad=p2)
    assert y2.shape == y2_ref.shape
    assert jnp.allclose(y2, y2_ref, atol=2e-3, rtol=2e-3)

    print("KERNEL_OK")
</pallas_src>

<mosaic_0001>
module attributes {stable_mosaic.version = 11 : i64} {
  func.func @_deconv_kernel(%arg0: i32, %arg1: memref<1x4x256xf32, #tpu.memory_space<vmem>>, %arg2: memref<32x16xf32, #tpu.memory_space<vmem>>, %arg3: memref<32x1xf32, #tpu.memory_space<vmem>>, %arg4: memref<1x32x306xf32, #tpu.memory_space<vmem>>, %arg5: memref<4x325xf32, #tpu.memory_space<vmem>>) attributes {dimension_semantics = [#tpu.dimension_semantics<parallel>], iteration_bounds = array<i64: 2>, scalar_prefetch = 0 : i64, scratch_operands = 1 : i64, tpu.core_type = #tpu.core_type<tc>, window_params = [{transform_indices = @transform_0, window_bounds = array<i64: 1, 4, 256>}, {pipeline_mode = #tpu.pipeline_mode<synchronous>, transform_indices = @transform_1, window_bounds = array<i64: 32, 16>}, {pipeline_mode = #tpu.pipeline_mode<synchronous>, transform_indices = @transform_2, window_bounds = array<i64: 32, 1>}, {transform_indices = @transform_3, window_bounds = array<i64: 1, 32, 306>}]} {
    %cst = arith.constant 0.000000e+00 : f32
    %0 = vector.broadcast %cst : f32 to vector<4x325xf32>
    %c0 = arith.constant 0 : index
    %c0_0 = arith.constant 0 : index
    %1 = vector.load %arg5[%c0, %c0_0] : memref<4x325xf32, #tpu.memory_space<vmem>>, vector<4x325xf32>
    tpu.vector_store %arg5[%c0, %c0_0], %0 {strides = array<i32>} : memref<4x325xf32, #tpu.memory_space<vmem>>, vector<4x325xf32>,
    %c0_1 = arith.constant 0 : index
    %c0_2 = arith.constant 0 : index
    %c0_3 = arith.constant 0 : index
    %2 = vector.load %arg1[%c0_1, %c0_2, %c0_3] : memref<1x4x256xf32, #tpu.memory_space<vmem>>, vector<1x4x16xf32>
    %3 = vector.shape_cast %2 : vector<1x4x16xf32> to vector<4x16xf32>
    %c0_4 = arith.constant 0 : index
    %c19 = arith.constant 19 : index
    %4 = vector.load %arg5[%c0_4, %c19] : memref<4x325xf32, #tpu.memory_space<vmem>>, vector<4x16xf32>
    tpu.vector_store %arg5[%c0_4, %c19], %3 {strides = array<i32>} : memref<4x325xf32, #tpu.memory_space<vmem>>, vector<4x16xf32>,
    %c0_5 = arith.constant 0 : index
    %c0_6 = arith.constant 0 : index
    %c16 = arith.constant 16 : index
    %5 = vector.load %arg1[%c0_5, %c0_6, %c16] : memref<1x4x256xf32, #tpu.memory_space<vmem>>, vector<1x4x16xf32>
    %6 = vector.shape_cast %5 : vector<1x4x16xf32> to vector<4x16xf32>
    %c0_7 = arith.constant 0 : index
    %c37 = arith.constant 37 : index
    %7 = vector.load %arg5[%c0_7, %c37] : memref<4x325xf32, #tpu.memory_space<vmem>>, vector<4x16xf32>
    tpu.vector_store %arg5[%c0_7, %c37], %6 {strides = array<i32>} : memref<4x325xf32, #tpu.memory_space<vmem>>, vector<4x16xf32>,
    %c0_8 = arith.constant 0 : index
    %c0_9 = arith.constant 0 : index
    %c32 = arith.constant 32 : index
    %8 = vector.load %arg1[%c0_8, %c0_9, %c32] : memref<1x4x256xf32, #tpu.memory_space<vmem>>, vector<1x4x16xf32>
    %9 = vector.shape_cast %8 : vector<1x4x16xf32> to vector<4x16xf32>
    %c0_10 = arith.constant 0 : index
    %c55 = arith.constant 55 : index
    %10 = vector.load %arg5[%c0_10, %c55] : memref<4x325xf32, #tpu.memory_space<vmem>>, vector<4x16xf32>
    tpu.vector_store %arg5[%c0_10, %c55], %9 {strides = array<i32>} : memref<4x325xf32, #tpu.memory_space<vmem>>, vector<4x16xf32>,
    %c0_11 = arith.constant 0 : index
    %c0_12 = arith.constant 0 : index
    %c48 = arith.constant 48 : index
    %11 = vector.load %arg1[%c0_11, %c0_12, %c48] : memref<1x4x256xf32, #tpu.memory_space<vmem>>, vector<1x4x16xf32>
    %12 = vector.shape_cast %11 : vector<1x4x16xf32> to vector<4x16xf32>
    %c0_13 = arith.constant 0 : index
    %c73 = arith.constant 73 : index
    %13 = vector.load %arg5[%c0_13, %c73] : memref<4x325xf32, #tpu.memory_space<vmem>>, vector<4x16xf32>
    tpu.vector_store %arg5[%c0_13, %c73], %12 {strides = array<i32>} : memref<4x325xf32, #tpu.memory_space<vmem>>, vector<4x16xf32>,
    %c0_14 = arith.constant 0 : index
    %c0_15 = arith.constant 0 : index
    %c64 = arith.constant 64 : index
    %14 = vector.load %arg1[%c0_14, %c0_15, %c64] : memref<1x4x256xf32, #tpu.memory_space<vmem>>, vector<1x4x16xf32>
    %15 = vector.shape_cast %14 : vector<1x4x16xf32> to vector<4x16xf32>
    %c0_16 = arith.constant 0 : index
    %c91 = arith.constant 91 : index
    %16 = vector.load %arg5[%c0_16, %c91] : memref<4x325xf32, #tpu.memory_space<vmem>>, vector<4x16xf32>
    tpu.vector_store %arg5[%c0_16, %c91], %15 {strides = array<i32>} : memref<4x325xf32, #tpu.memory_space<vmem>>, vector<4x16xf32>,
    %c0_17 = arith.constant 0 : index
    %c0_18 = arith.constant 0 : index
    %c80 = arith.constant 80 : index
    %17 = vector.load %arg1[%c0_17, %c0_18, %c80] : memref<1x4x256xf32, #tpu.memory_space<vmem>>, vector<1x4x16xf32>
    %18 = vector.shape_cast %17 : vector<1x4x16xf32> to vector<4x16xf32>
    %c0_19 = arith.constant 0 : index
    %c109 = arith.constant 109 : index
    %19 = vector.load %arg5[%c0_19, %c109] : memref<4x325xf32, #tpu.memory_space<vmem>>, vector<4x16xf32>
    tpu.vector_store %arg5[%c0_19, %c109], %18 {strides = array<i32>} : memref<4x325xf32, #tpu.memory_space<vmem>>, vector<4x16xf32>,
    %c0_20 = arith.constant 0 : index
    %c0_21 = arith.constant 0 : index
    %c96 = arith.constant 96 : index
    %20 = vector.load %arg1[%c0_20, %c0_21, %c96] : memref<1x4x256xf32, #tpu.memory_space<vmem>>, vector<1x4x16xf32>
    %21 = vector.shape_cast %20 : vector<1x4x16xf32> to vector<4x16xf32>
    %c0_22 = arith.constant 0 : index
    %c127 = arith.constant 127 : index
    %22 = vector.load %arg5[%c0_22, %c127] : memref<4x325xf32, #tpu.memory_space<vmem>>, vector<4x16xf32>
    tpu.vector_store %arg5[%c0_22, %c127], %21 {strides = array<i32>} : memref<4x325xf32, #tpu.memory_space<vmem>>, vector<4x16xf32>,
    %c0_23 = arith.constant 0 : index
    %c0_24 = arith.constant 0 : index
    %c112 = arith.constant 112 : index
    %23 = vector.load %arg1[%c0_23, %c0_24, %c112] : memref<1x4x256xf32, #tpu.memory_space<vmem>>, vector<1x4x16xf32>
    %24 = vector.shape_cast %23 : vector<1x4x16xf32> to vector<4x16xf32>
    %c0_25 = arith.constant 0 : index
    %c145 = arith.constant 145 : index
    %25 = vector.load %arg5[%c0_25, %c145] : memref<4x325xf32, #tpu.memory_space<vmem>>, vector<4x16xf32>
    tpu.vector_store %arg5[%c0_25, %c145], %24 {strides = array<i32>} : memref<4x325xf32, #tpu.memory_space<vmem>>, vector<4x16xf32>,
    %c0_26 = arith.constant 0 : index
    %c0_27 = arith.constant 0 : index
    %c128 = arith.constant 128 : index
    %26 = vector.load %arg1[%c0_26, %c0_27, %c128] : memref<1x4x256xf32, #tpu.memory_space<vmem>>, vector<1x4x16xf32>
    %27 = vector.shape_cast %26 : vector<1x4x16xf32> to vector<4x16xf32>
    %c0_28 = arith.constant 0 : index
    %c163 = arith.constant 163 : index
    %28 = vector.load %arg5[%c0_28, %c163] : memref<4x325xf32, #tpu.memory_space<vmem>>, vector<4x16xf32>
    tpu.vector_store %arg5[%c0_28, %c163], %27 {strides = array<i32>} : memref<4x325xf32, #tpu.memory_space<vmem>>, vector<4x16xf32>,
    %c0_29 = arith.constant 0 : index
    %c0_30 = arith.constant 0 : index
    %c144 = arith.constant 144 : index
    %29 = vector.load %arg1[%c0_29, %c0_30, %c144] : memref<1x4x256xf32, #tpu.memory_space<vmem>>, vector<1x4x16xf32>
    %30 = vector.shape_cast %29 : vector<1x4x16xf32> to vector<4x16xf32>
    %c0_31 = arith.constant 0 : index
    %c181 = arith.constant 181 : index
    %31 = vector.load %arg5[%c0_31, %c181] : memref<4x325xf32, #tpu.memory_space<vmem>>, vector<4x16xf32>
    tpu.vector_store %arg5[%c0_31, %c181], %30 {strides = array<i32>} : memref<4x325xf32, #tpu.memory_space<vmem>>, vector<4x16xf32>,
    %c0_32 = arith.constant 0 : index
    %c0_33 = arith.constant 0 : index
    %c160 = arith.constant 160 : index
    %32 = vector.load %arg1[%c0_32, %c0_33, %c160] : memref<1x4x256xf32, #tpu.memory_space<vmem>>, vector<1x4x16xf32>
    %33 = vector.shape_cast %32 : vector<1x4x16xf32> to vector<4x16xf32>
    %c0_34 = arith.constant 0 : index
    %c199 = arith.constant 199 : index
    %34 = vector.load %arg5[%c0_34, %c199] : memref<4x325xf32, #tpu.memory_space<vmem>>, vector<4x16xf32>
    tpu.vector_store %arg5[%c0_34, %c199], %33 {strides = array<i32>} : memref<4x325xf32, #tpu.memory_space<vmem>>, vector<4x16xf32>,
    %c0_35 = arith.constant 0 : index
    %c0_36 = arith.constant 0 : index
    %c176 = arith.constant 176 : index
    %35 = vector.load %arg1[%c0_35, %c0_36, %c176] : memref<1x4x256xf32, #tpu.memory_space<vmem>>, vector<1x4x16xf32>
    %36 = vector.shape_cast %35 : vector<1x4x16xf32> to vector<4x16xf32>
    %c0_37 = arith.constant 0 : index
    %c217 = arith.constant 217 : index
    %37 = vector.load %arg5[%c0_37, %c217] : memref<4x325xf32, #tpu.memory_space<vmem>>, vector<4x16xf32>
    tpu.vector_store %arg5[%c0_37, %c217], %36 {strides = array<i32>} : memref<4x325xf32, #tpu.memory_space<vmem>>, vector<4x16xf32>,
    %c0_38 = arith.constant 0 : index
    %c0_39 = arith.constant 0 : index
    %c192 = arith.constant 192 : index
    %38 = vector.load %arg1[%c0_38, %c0_39, %c192] : memref<1x4x256xf32, #tpu.memory_space<vmem>>, vector<1x4x16xf32>
    %39 = vector.shape_cast %38 : vector<1x4x16xf32> to vector<4x16xf32>
    %c0_40 = arith.constant 0 : index
    %c235 = arith.constant 235 : index
    %40 = vector.load %arg5[%c0_40, %c235] : memref<4x325xf32, #tpu.memory_space<vmem>>, vector<4x16xf32>
    tpu.vector_store %arg5[%c0_40, %c235], %39 {strides = array<i32>} : memref<4x325xf32, #tpu.memory_space<vmem>>, vector<4x16xf32>,
    %c0_41 = arith.constant 0 : index
    %c0_42 = arith.constant 0 : index
    %c208 = arith.constant 208 : index
    %41 = vector.load %arg1[%c0_41, %c0_42, %c208] : memref<1x4x256xf32, #tpu.memory_space<vmem>>, vector<1x4x16xf32>
    %42 = vector.shape_cast %41 : vector<1x4x16xf32> to vector<4x16xf32>
    %c0_43 = arith.constant 0 : index
    %c253 = arith.constant 253 : index
    %43 = vector.load %arg5[%c0_43, %c253] : memref<4x325xf32, #tpu.memory_space<vmem>>, vector<4x16xf32>
    tpu.vector_store %arg5[%c0_43, %c253], %42 {strides = array<i32>} : memref<4x325xf32, #tpu.memory_space<vmem>>, vector<4x16xf32>,
    %c0_44 = arith.constant 0 : index
    %c0_45 = arith.constant 0 : index
    %c224 = arith.constant 224 : index
    %44 = vector.load %arg1[%c0_44, %c0_45, %c224] : memref<1x4x256xf32, #tpu.memory_space<vmem>>, vector<1x4x16xf32>
    %45 = vector.shape_cast %44 : vector<1x4x16xf32> to vector<4x16xf32>
    %c0_46 = arith.constant 0 : index
    %c271 = arith.constant 271 : index
    %46 = vector.load %arg5[%c0_46, %c271] : memref<4x325xf32, #tpu.memory_space<vmem>>, vector<4x16xf32>
    tpu.vector_store %arg5[%c0_46, %c271], %45 {strides = array<i32>} : memref<4x325xf32, #tpu.memory_space<vmem>>, vector<4x16xf32>,
    %c0_47 = arith.constant 0 : index
    %c0_48 = arith.constant 0 : index
    %c240 = arith.constant 240 : index
    %47 = vector.load %arg1[%c0_47, %c0_48, %c240] : memref<1x4x256xf32, #tpu.memory_space<vmem>>, vector<1x4x16xf32>
    %48 = vector.shape_cast %47 : vector<1x4x16xf32> to vector<4x16xf32>
    %c0_49 = arith.constant 0 : index
    %c289 = arith.constant 289 : index
    %49 = vector.load %arg5[%c0_49, %c289] : memref<4x325xf32, #tpu.memory_space<vmem>>, vector<4x16xf32>
    tpu.vector_store %arg5[%c0_49, %c289], %48 {strides = array<i32>} : memref<4x325xf32, #tpu.memory_space<vmem>>, vector<4x16xf32>,
    %c0_50 = arith.constant 0 : index
    %c0_51 = arith.constant 0 : index
    %50 = vector.load %arg5[%c0_50, %c0_51] : memref<4x325xf32, #tpu.memory_space<vmem>>, vector<4x306xf32>
    %c0_52 = arith.constant 0 : index
    %c1 = arith.constant 1 : index
    %51 = vector.load %arg5[%c0_52, %c1] : memref<4x325xf32, #tpu.memory_space<vmem>>, vector<4x306xf32>
    %c0_53 = arith.constant 0 : index
    %c18 = arith.constant 18 : index
    %52 = vector.load %arg5[%c0_53, %c18] : memref<4x325xf32, #tpu.memory_space<vmem>>, vector<4x306xf32>
    %c0_54 = arith.constant 0 : index
    %c19_55 = arith.constant 19 : index
    %53 = vector.load %arg5[%c0_54, %c19_55] : memref<4x325xf32, #tpu.memory_space<vmem>>, vector<4x306xf32>
    %54 = tpu.concatenate %50, %51, %52, %53 in 0 : vector<4x306xf32>, vector<4x306xf32>, vector<4x306xf32>, vector<4x306xf32> -> vector<16x306xf32>
    %c0_56 = arith.constant 0 : index
    %c0_57 = arith.constant 0 : index
    %55 = vector.load %arg2[%c0_56, %c0_57] : memref<32x16xf32, #tpu.memory_space<vmem>>, vector<32x16xf32>
    %cst_58 = arith.constant dense<0.000000e+00> : vector<32x306xf32>
    %56 = tpu.matmul %55, %54, %cst_58 {dimension_numbers = #tpu.dot_dimension_numbers<[1], [0], [0], [1], [0, 0, 1, 1], [], []>} : vector<32x16xf32>, vector<16x306xf32>, vector<32x306xf32> -> vector<32x306xf32>
    %c0_59 = arith.constant 0 : index
    %c0_60 = arith.constant 0 : index
    %57 = vector.load %arg3[%c0_59, %c0_60] : memref<32x1xf32, #tpu.memory_space<vmem>>, vector<32x1xf32>
    %58 = vector.broadcast %57 : vector<32x1xf32> to vector<32x306xf32>
    %59 = arith.addf %56, %58 : vector<32x306xf32>
    %c0_61 = arith.constant 0 : index
    %c0_62 = arith.constant 0 : index
    %c0_63 = arith.constant 0 : index
    %60 = vector.load %arg4[%c0_61, %c0_62, %c0_63] : memref<1x32x306xf32, #tpu.memory_space<vmem>>, vector<1x32x306xf32>
    %61 = vector.shape_cast %60 : vector<1x32x306xf32> to vector<32x306xf32>
    %62 = vector.shape_cast %59 : vector<32x306xf32> to vector<1x32x306xf32>
    tpu.vector_store %arg4[%c0_61, %c0_62, %c0_63], %62 {strides = array<i32>} : memref<1x32x306xf32, #tpu.memory_space<vmem>>, vector<1x32x306xf32>,
    return
  }
  func.func @transform_0(%arg0: i32) -> (i32, i32, i32) {
    %c0_i32 = arith.constant 0 : i32
    %c0_i32_0 = arith.constant 0 : i32
    %c0_i32_1 = arith.constant 0 : i32
    return %arg0, %c0_i32, %c0_i32_0 : i32, i32, i32
  }
  func.func @transform_1(%arg0: i32) -> (i32, i32) {
    %c0_i32 = arith.constant 0 : i32
    %c0_i32_0 = arith.constant 0 : i32
    %c0_i32_1 = arith.constant 0 : i32
    return %c0_i32, %c0_i32_0 : i32, i32
  }
  func.func @transform_2(%arg0: i32) -> (i32, i32) {
    %c0_i32 = arith.constant 0 : i32
    %c0_i32_0 = arith.constant 0 : i32
    %c0_i32_1 = arith.constant 0 : i32
    return %c0_i32, %c0_i32_0 : i32, i32
  }
  func.func @transform_3(%arg0: i32) -> (i32, i32, i32) {
    %c0_i32 = arith.constant 0 : i32
    %c0_i32_0 = arith.constant 0 : i32
    %c0_i32_1 = arith.constant 0 : i32
    return %arg0, %c0_i32, %c0_i32_0 : i32, i32, i32
  }
}

</mosaic_0001>

<bundles_post_ra>
// kernel: tpu_custom_call.1
= control target key start
LH: loop header
LB: loop body
LE: loop exit
PB: predicated region body
PF: predicated region fallthrough
CT: control target
= control target key end

     0   :  { %8 = vsyncpa [#allocation4], 0  ;;  %s989_s0 = inlined_call_operand.vmem [shape: f32[2,4,256], index: 0, kind: input, shape index: {}]   ;;  %s990_s1 = inlined_call_operand.vmem [shape: f32[32,16], index: 1, kind: input, shape index: {}]   ;;  %s991_s2 = inlined_call_operand.vmem [shape: f32[32,1], index: 2, kind: input, shape index: {}]   ;;  %s992_s3 = inlined_call_operand.hbm [shape: f32[2,32,306], index: 3, kind: output, shape index: {}]  }
   0x1   :  { %10 = vsyncpa [#allocation4 + $0x1], 0  ;;  %s806_s12 = smov 0   ;;  %s808_s13 = smov 0  }
   0x2   :  { %s810_s14 = smov 0   ;;  %s812_s15 = smov 0  }
   0x3 LB: > { %s827_s16 = sadd.s32 4294967295, %s761_s15   ;;  %s589_s17 = sadd.s32 4294967294, %s761_s15   ;;  %s761_s15 = sphi %s812_s15, %s998_s15   ;;  %s757_s14 = sphi %s810_s14, %s997_s14   ;;  %s753_s13 = sphi %s808_s13, %s996_s13   ;;  %s749_s12 = sphi %s806_s12, %s995_s12  }
   0x4   : > { %s831_s18 = sadd.s32 1, %s761_s15   ;;  %s91_s19 = sadd.s32 1, %s757_s14 }
   0x5   : > { %s88_s20 = ssub.s32 %s761_s15, %s831_s18  ;;  %p101_p0 = scmp.ne.s32.totalorder %s757_s14, %s753_s13 }
   0x6   : > { %p89_p1 = scmp.eq.s32.totalorder %s88_s20, 0  ;;  %p102_p2 = scmp.eq.s32.totalorder %s827_s16, 1 }
   0x7   : > { %p107_p3 = scmp.ne.s32.totalorder %s753_s13, %s749_s12  ;;  %p108_p4 = scmp.eq.s32.totalorder %s589_s17, 1 }
   0x8   : > { %s842_s21 = scalar_select %p89_p1, %s757_s14, %s91_s19  }
   0x9   : > { %p844_p5 = por %p102_p2, %p101_p0  ;;  %p848_p6 = por %p108_p4, %p107_p3 }
   0xa   : > { %p592_p7 = scmp.ge.s32.totalorder %s761_s15, 1  ;;  %p140_p8 = scmp.lt.s32.totalorder %s761_s15, 3 }
   0xc   : > { %p141_p9 = pnand %p592_p7, %p140_p8 }
   0xd   : > { %p164_p10 = scmp.lt.s32.totalorder (!%p141_p9), %s827_s16, 1  ;;  %s763_s29 = smov (!%p141_p9), 19  }
   0xe   : > { %144 = sbr.rel (%p141_p9) target bundleno = 493 (0x1ed), region = 32  ;;  %s764_s30 = smov (!%p141_p9), 23  }
   0xf   : > { %s765_s4 = smov (!%p141_p9), 31   ;;  %s766_s5 = smov (!%p141_p9), 21  }
  0x10   : > { %s767_s6 = smov (!%p141_p9), 25   ;;  %s769_s7 = smov (!%p141_p9), 27  }
  0x11   : > { %s770_s8 = smov (!%p141_p9), 29   ;;  %s771_s9 = smov (!%p141_p9), 33  }
  0x12   : > { %s772_s10 = smov (!%p141_p9), 35   ;;  %s773_s11 = smov (!%p141_p9), 37  }
  0x13   : > { %s165_s24 = scalar_select %p164_p10, %s827_s16, 1  ;;  %vm170_vm0 = vcmask 560128   ;;  %v768_v6 = vmov 0.0   ;;  %vm177_vm1 = vcmask 281752   ;;  %vm184_vm2 = vcmask 429352  }
  0x14   : > { %169 = vst [vmem:[#allocation2] sm:$0xff] %v768_v6  ;;  %s774_s17 = smov 39   ;;  %s775_s19 = smov 45   ;;  %vm191_vm3 = vcmask 576952   ;;  %vm198_vm4 = vcmask 724552   ;;  %vm205_vm5 = vcmask 872152  }
  0x15   : > { %s610_s25 = sshll.u32 %s165_s24, 3  ;;  %171 = vst.msk [vmem:[#allocation2 + $0x8] sm:$0xf] %vm170_vm0, %v768_v6  ;;  %s776_s20 = smov 41   ;;  %vm222_vm6 = vcmask 1044472   ;;  %vm223_vm7 = vcmask 121860  }
  0x16   : > { %s859_s28 = scalar_lea.vmem %s989_s0, %s610_s25  ;;  %s777_s24 = smov 43   ;;  %vm219_vm8 = vcmask 252928   ;;  %vm212_vm9 = vcmask 1019752   ;;  %vm224_vm10 = vmor %vm223_vm7, %vm222_vm6  ;;  %vm231_vm11 = vcmask 265352   ;;  %vm238_vm12 = vcmask 412952  }
  0x17   : > { %v172_v0 = vld [vmem:[%s859_s28] sm:$0xf]  ;;  %v233_v9 = vld [vmem:[%s859_s28 + $0x4] sm:$0xf]  ;;  %s778_s25 = smov 47   ;;  %s779_s26 = smov 49  }
  0x18   : > { %v186_v1 = vld [vmem:[%s859_s28] sm:$0xf]  ;;  %174 = vrot.lane.b32.xlu0 %v172_v0, %s763_s29  ;;  %v240_v10 = vld [vmem:[%s859_s28 + $0x4] sm:$0xf]  ;;  %vm245_vm13 = vcmask 560552   ;;  %vm252_vm14 = vcmask 708152  }
  0x19   : > { %188 = vrot.lane.b32.xlu1 %v186_v1, %s764_s30  ;;  %v214_v2 = vld [vmem:[%s859_s28] sm:$0xf]  ;;  %v247_v11 = vld [vmem:[%s859_s28 + $0x4] sm:$0xf]  ;;  %vm276_vm15 = vcmask 1044456   ;;  %vm277_vm0 = vcmask 105476  }
  0x1a   : > { %216 = vrot.lane.b32.xlu2 %v214_v2, %s765_s4  ;;  %v179_v3 = vld [vmem:[%s859_s28] sm:$0xf]  ;;  %v268_v12 = vld [vmem:[%s859_s28 + $0x4] sm:$0xf]  ;;  %vm292_vm6 = vcmask 396552   ;;  %s780_s27 = smov 110  }
  0x1b   : > { %v193_v4 = vld [vmem:[%s859_s28] sm:$0xf]  ;;  %v254_v13 = vld [vmem:[%s859_s28 + $0x4] sm:$0xf]  ;;  %s782_s29 = smov 127   ;;  %v783_v56 = vmov 0  }
  0x1c   : > { %v200_v5 = vld [vmem:[%s859_s28] sm:$0xf]  ;;  %v261_v14 = vld [vmem:[%s859_s28 + $0x4] sm:$0xf]  ;;  %696 = vset.pattern.permute.xlu1 %v783_v56  ;;  %698 = vset.pattern.permute.xlu0 %v783_v56  ;;  %vm338_vm7 = vcmask 900096   ;;  %v376_v1 = vld [vmem:[%s991_s2 + $0x10] sm:$0xff] }
  0x1d   : > { %v207_v7 = vld [vmem:[%s859_s28] sm:$0xf]  ;;  %v280_v15 = vld [vmem:[%s859_s28 + $0x4] sm:$0xf]  ;;  %697 = vset.pattern.permute.xlu2 %v783_v56  ;;  %s618_s4 = smul.u32 96, %s827_s16 }
  0x1e   : > { %v226_v8 = vld [vmem:[%s859_s28] sm:$0xf]  ;;  %v287_v16 = vld [vmem:[%s859_s28 + $0x4] sm:$0xf]  ;;  %s781_s28 = smov 109  }
  0x1f   : > { %v374_v0 = vld [vmem:[%s991_s2] sm:$0xff] }
  0x20   : > { %181 = vrot.lane.b32.xlu0 %v179_v3, %s766_s5 }
  0x21   : > { %195 = vrot.lane.b32.xlu1 %v193_v4, %s767_s6 }
  0x22   : > { %202 = vrot.lane.b32.xlu2 %v200_v5, %s769_s7  ;;  %v375_v5 = vld [vmem:[%s991_s2 + $0x8] sm:$0xff]  ;;  %s523_s7 = scalar_lea.hbm %s992_s3, %s618_s4 }
  0x23   : > { %s526_s16 = sshll.u32 %s523_s7, 4  ;;  %s527_s16 = int_to_ptr.hbm [resolvable:$true] %s526_s16 }
  0x28   : > { %209 = vrot.lane.b32.xlu0 %v207_v7, %s770_s8 }
  0x29   : > { %228 = vrot.lane.b32.xlu1 %v226_v8, %s771_s9  ;;  %v371_v8 = vld [vmem:[%s990_s1 + $0x8] sm:$0xff] }
  0x2a   : > { %235 = vrot.lane.b32.xlu2 %v233_v9, %s772_s10  ;;  %v370_v9 = vld [vmem:[%s990_s1] sm:$0xff]  ;;  %s713_s10 = sshra.s32 %s527_s16, 4  ;;  %s714_s10 = int_to_ptr.hbm [resolvable:$true] %s713_s10 }
  0x2b   : > { %p720_p0 = scmp.lt.s32.totalorder %s714_s10, %s992_s3 }
  0x30   : > { %242 = vrot.lane.b32.xlu0 %v240_v10, %s773_s11  ;;  %s715_s11 = scalar_lea.hbm %s714_s10, 96 }
  0x31   : > { %249 = vrot.lane.b32.xlu1 %v247_v11, %s774_s17  ;;  %v377_v11 = vld [vmem:[%s991_s2 + $0x18] sm:$0xff]  ;;  %p716_p11 = scmp.ne.s32.totalorder %s714_s10, %s715_s11 }
  0x32   : > { %270 = vrot.lane.b32.xlu2 %v268_v12, %s775_s19 }
  0x33   : > { %p717_p12 = pnand %p716_p11, %p844_p5 }
  0x35   : > { %p718_p13 = pneg %p717_p12 }
  0x38   : > { %256 = vrot.lane.b32.xlu0 %v254_v13, %s776_s20  ;;  %s719_s20 = scalar_lea.hbm %s992_s3, 192 }
  0x39   : > { %263 = vrot.lane.b32.xlu1 %v261_v14, %s777_s24  ;;  %p721_p1 = scmp.lt.s32.totalorder %s719_s20, %s715_s11 }
  0x3a   : > { %282 = vrot.lane.b32.xlu2 %v280_v15, %s778_s25 }
  0x3b   : > { %p722_p2 = por %p721_p1, %p720_p0 }
  0x3d   : > { %p723_p3 = pnand %p722_p2, %p718_p13 }
  0x40   : > { %289 = vrot.lane.b32.xlu0 %v287_v16, %s779_s26 }
  0x74   : > { %v217_v17 = vpop.permute.xlu2 %216 }
  0x75   : > { %v218_v23 = vrot.slane %v217_v17, 4 }
  0x77   : > { %v220_v27 = vsel %vm219_vm8, %v218_v23, %v217_v17  ;;  %vm357_vm8 = vcmask 891904  }
  0x7c   : > { %v203_v20 = vpop.permute.xlu2 %202 }
  0x84   : > { %v236_v24 = vpop.permute.xlu2 %235 }
  0x8a   : > { %v175_v18 = vpop.permute.xlu0 %174 }
  0x8b   : > { %v189_v19 = vpop.permute.xlu1 %188  ;;  %178 = vst.msk [vmem:[#allocation2] sm:$0xf] %vm177_vm1, %v175_v18  ;;  %vm259_vm1 = vcmask 855752   ;;  %v372_v18 = vld [vmem:[%s990_s1 + $0x10] sm:$0xff] }
  0x8c   : > { %v271_v30 = vpop.permute.xlu2 %270 }
  0x8d   : > { %v272_v31 = vrot.slane %v271_v30, 4 }
  0x92   : > { %v182_v21 = vpop.permute.xlu0 %181 }
  0x93   : > { %v196_v22 = vpop.permute.xlu1 %195  ;;  %185 = vst.msk [vmem:[#allocation2] sm:$0xf] %vm184_vm2, %v182_v21  ;;  %vm273_vm2 = vcmask 367616  }
  0x94   : > { %192 = vst.msk [vmem:[#allocation2] sm:$0xf] %vm191_vm3, %v189_v19  ;;  %vm266_vm3 = vcmask 1003352   ;;  %v283_v34 = vpop.permute.xlu2 %282  ;;  %v274_v35 = vsel %vm273_vm2, %v272_v31, %v271_v30 }
  0x95   : > { %199 = vst.msk [vmem:[#allocation2] sm:$0xf] %vm198_vm4, %v196_v22  ;;  %vm278_vm4 = vmor %vm277_vm0, %vm276_vm15  ;;  %v373_v22 = vld [vmem:[%s990_s1 + $0x18] sm:$0xff] }
  0x96   : > { %206 = vst.msk [vmem:[#allocation2] sm:$0xf] %vm205_vm5, %v203_v20  ;;  %vm285_vm5 = vcmask 248952  }
  0x9a   : > { %v210_v25 = vpop.permute.xlu0 %209 }
  0x9b   : > { %v229_v26 = vpop.permute.xlu1 %228  ;;  %213 = vst.msk [vmem:[#allocation2] sm:$0xf] %vm212_vm9, %v210_v25  ;;  %vm320_vm9 = vcmask 1039360  }
  0x9c   : > { %225 = vst.msk [vmem:[#allocation2] sm:$0xff] %vm224_vm10, %v220_v27  ;;  %vm363_vm10 = vcmask 1043456  }
  0x9d   : > { %232 = vst.msk [vmem:[#allocation2 + $0x4] sm:$0xf] %vm231_vm11, %v229_v26  ;;  %vm398_vm11 = vcmask 130048  }
  0x9e   : > { %239 = vst.msk [vmem:[#allocation2 + $0x4] sm:$0xf] %vm238_vm12, %v236_v24  ;;  %vm500_vm12 = vcmask 408576  }
  0xa2   : > { %v243_v28 = vpop.permute.xlu0 %242 }
  0xa3   : > { %v250_v29 = vpop.permute.xlu1 %249  ;;  %246 = vst.msk [vmem:[#allocation2 + $0x4] sm:$0xf] %vm245_vm13, %v243_v28 }
  0xa4   : > { %253 = vst.msk [vmem:[#allocation2 + $0x4] sm:$0xf] %vm252_vm14, %v250_v29 }
  0xaa   : > { %v257_v32 = vpop.permute.xlu0 %256 }
  0xab   : > { %v264_v33 = vpop.permute.xlu1 %263  ;;  %260 = vst.msk [vmem:[#allocation2 + $0x4] sm:$0xf] %vm259_vm1, %v257_v32 }
  0xac   : > { %267 = vst.msk [vmem:[#allocation2 + $0x4] sm:$0xf] %vm266_vm3, %v264_v33 }
  0xad   : > { %279 = vst.msk [vmem:[#allocation2 + $0x4] sm:$0xff] %vm278_vm4, %v274_v35 }
  0xae   : > { %286 = vst.msk [vmem:[#allocation2 + $0x8] sm:$0xf] %vm285_vm5, %v283_v34 }
  0xb2   : > { %v290_v36 = vpop.permute.xlu0 %289 }
  0xb3   : > { %293 = vst.msk [vmem:[#allocation2 + $0x8] sm:$0xf] %vm292_vm6, %v290_v36 }
  0xb4   : > { %v294_v37 = vld [vmem:[#allocation2] sm:$0xff] }
  0xb5   : > { %298 = vst [vmem:[#allocation1] ss:$2 sm:$0xff] %v294_v37 }
  0xba   : > { %v295_v38 = vld [vmem:[#allocation2 + $0x8] sm:$0xf] }
  0xbb   : > { %300 = vst [vmem:[#allocation1 + $0x10] ss:$2 sm:$0xff] %v295_v38 }
  0xbc   : > { %v877_v39 = vld.sshfl [vmem:[#allocation1] sm:$0xff pattern:$0x75316420]  ;;  %v879_v40 = vld.sshfl [vmem:[#allocation1 + $0x8] sm:$0xff pattern:$0x75316420] }
  0xbd   : > { %308 = vst [vmem:[#allocation1 + $0x1] ss:$2 sm:$0xff] %v294_v37 }
  0xc2   : > { %v881_v41 = vld.sshfl [vmem:[#allocation1 + $0x10] sm:$0xff pattern:$0x75316420] }
  0xc3   : > { %310 = vst [vmem:[#allocation1 + $0x11] ss:$2 sm:$0xff] %v295_v38 }
  0xc4   : > { %v311_v42 = vld.sshfl [vmem:[#allocation1] sm:$0xff pattern:$0x75316420]  ;;  %v312_v43 = vld.sshfl [vmem:[#allocation1 + $0x8] sm:$0xff pattern:$0x75316420] }
  0xc5   : > { %326 = vst [vmem:[#allocation1] ss:$2 sm:$0xff] %v294_v37  ;;  %v691_v53 = vpack.i.bf16 %v312_v43, %v311_v42 }
  0xca   : > { %v313_v44 = vld.sshfl [vmem:[#allocation1 + $0x10] sm:$0xff pattern:$0x75316420] }
  0xcb   : > { %328 = vst [vmem:[#allocation1 + $0x10] ss:$2 sm:$0xff] %v295_v38 }
  0xcc   : > { %v329_v45 = vld.sshfl [vmem:[#allocation1] sm:$0xff pattern:$0x75316420]  ;;  %v330_v46 = vld.sshfl [vmem:[#allocation1 + $0x8] sm:$0xff pattern:$0x75316420] }
  0xcd   : > { %v681_v47 = vpack.i.bf16 %v330_v46, %v329_v45  ;;  %345 = vst [vmem:[#allocation1 + $0x1] ss:$2 sm:$0xff] %v294_v37 }
  0xcf   : > { %682 = vrot.lane.b32.xlu1 %v681_v47, %s780_s27 }
  0xd2   : > { %v331_v48 = vld.sshfl [vmem:[#allocation1 + $0x10] sm:$0xff pattern:$0x75316420] }
  0xd3   : > { %336 = vrot.lane.b32.xlu0 %v331_v48, %s780_s27  ;;  %347 = vst [vmem:[#allocation1 + $0x11] ss:$2 sm:$0xff] %v295_v38 }
  0xd4   : > { %v348_v49 = vld.sshfl [vmem:[#allocation1] sm:$0xff pattern:$0x75316420]  ;;  %v349_v50 = vld.sshfl [vmem:[#allocation1 + $0x8] sm:$0xff pattern:$0x75316420] }
  0xd5   : > { %v686_v51 = vpack.i.bf16 %v349_v50, %v348_v49 }
  0xd7   : > { %687 = vrot.lane.b32.xlu2 %v686_v51, %s781_s28 }
  0xda   : > { %v350_v52 = vld.sshfl [vmem:[#allocation1 + $0x10] sm:$0xff pattern:$0x75316420] }
  0xdb   : > { %318 = vrot.lane.b32.xlu0 %v313_v44, %s782_s29  ;;  %355 = vrot.lane.b32.xlu1 %v350_v52, %s781_s28  ;;  %s161_s28 = sand.u32 1, %s753_s13  }
  0xdc   : > { %s512_s9 = scalar_lea.sflag [#allocation4], %s161_s28 }
  0xdf   : > { %692 = vrot.lane.b32.xlu2 %v691_v53, %s782_s29  ;;  %s617_s29 = smul.u32 96, %s161_s28 }
  0xe1   : > { %s937_s30 = scalar_lea.vmem [#allocation3], %s617_s29 }
  0xe2   : > { %s524_s8 = sshll.u32 %s937_s30, 4  ;;  %s525_s8 = int_to_ptr.vmem [resolvable:$true] %s524_s8 }
  0xe3   : > { %380 = vperm.xlu1 %696, %v374_v0   ;;  %390 = vperm.xlu0 %698, %v376_v1  }
  0xe7   : > { %385 = vperm.xlu2 %697, %v375_v5  }
  0xeb   : > { %395 = vperm.xlu1 %696, %v377_v11  }
 0x131   : > { %v688_v54 = vpop.permute.xlu2 %687 }
 0x132   : > { %v690_v57 = vunpack.i.h.bf16 %v688_v54  ;;  %v689_v58 = vunpack.i.l.bf16 %v688_v54 }
 0x134   : > { %v358_v3 = vsel %vm357_vm8, %v689_v58, %v690_v57 }
 0x139   : > { %v693_v55 = vpop.permute.xlu2 %692 }
 0x13a   : > { %v695_v59 = vunpack.i.h.bf16 %v693_v55  ;;  %v694_v60 = vunpack.i.l.bf16 %v693_v55 }
 0x13c   : > { %v321_v4 = vsel %vm320_vm9, %v694_v60, %v695_v59 }
 0x13d   : > { %v364_v10 = vsel %vm363_vm10, %v877_v39, %v321_v4 }
 0x141   : > { %v683_v61 = vpop.permute.xlu1 %682  ;;  %v386_v26 = vpop.permute.xlu2 %385 }
 0x142   : > { %v685_v62 = vunpack.i.h.bf16 %v683_v61  ;;  %v684_v63 = vunpack.i.l.bf16 %v683_v61 }
 0x144   : > { %v339_v2 = vsel %vm338_vm7, %v684_v63, %v685_v62 }
 0x145   : > { %v337_v6 = vpop.permute.xlu0 %336  ;;  %v367_v7 = vsel %vm363_vm10, %v339_v2, %v358_v3 }
 0x146   : > { %425 = vmatpush.msra.mxu0 %v367_v7  ;;  %611 = vmatpush.msra.mxu3 %v367_v7  ;;  %v340_v14 = vsel %vm338_vm7, %v685_v62, %v337_v6 }
 0x148   : > { %426 = vmatpush.msra.mxu0 %v364_v10  ;;  %612 = vmatpush.msra.mxu3 %v364_v10 }
 0x149   : > { %596 = vmatmul.msk.f32.vlgmr.msra.gmra.mxu3 %vm398_vm11, %v371_v8  ;;  %595 = vmatmul.msk.f32.vlgmr.msra.gmra.mxu0 %vm398_vm11, %v370_v9 }
 0x14d   : > { %v319_v12 = vpop.permute.xlu0 %318  ;;  %v356_v13 = vpop.permute.xlu1 %355 }
 0x14e   : > { %v322_v15 = vsel %vm320_vm9, %v695_v59, %v319_v12  ;;  %v359_v16 = vsel %vm357_vm8, %v690_v57, %v356_v13  ;;  %v369_v17 = vsel %vm363_vm10, %v337_v6, %v356_v13  ;;  %v366_v20 = vsel %vm363_vm10, %v881_v41, %v319_v12 }
 0x14f   : > { %615 = vmatpush.msra.mxu2 %v369_v17  ;;  %v368_v19 = vsel %vm363_vm10, %v340_v14, %v359_v16  ;;  %v365_v21 = vsel %vm363_vm10, %v879_v40, %v322_v15 }
 0x150   : > { %454 = vmatpush.msrb.mxu0 %v368_v19  ;;  %613 = vmatpush.msra.mxu1 %v368_v19 }
 0x151   : > { %616 = vmatpush.msra.mxu2 %v366_v20  ;;  %597 = vmatmul.msk.f32.gmra.mxu3 %vm398_vm11, %v372_v18 }
 0x152   : > { %455 = vmatpush.msrb.mxu0 %v365_v21  ;;  %614 = vmatpush.msra.mxu1 %v365_v21 }
 0x153   : > { %604 = vmatmul.msk.f32.vlgmr.msra.gmra.mxu2 %vm398_vm11, %v371_v8  ;;  %600 = vmatmul.msk.f32.vlgmr.msra.gmra.mxu1 %vm398_vm11, %v371_v8 }
 0x154   : > { %483 = vmatpush.msra.mxu0 %v369_v17 }
 0x155   : > { %599 = vmatmul.msk.f32.vlgmr.msrb.gmra.mxu0 %vm398_vm11, %v370_v9  ;;  %v381_v23 = vpop.permute.xlu1 %380  ;;  %v391_v32 = vpop.permute.xlu0 %390 }
 0x156   : > { %484 = vmatpush.msra.mxu0 %v366_v20 }
 0x159   : > { %598 = vmatmul.msk.f32.gmra.mxu3 %vm398_vm11, %v373_v22 }
 0x15b   : > { %605 = vmatmul.msk.f32.gmra.mxu2 %vm398_vm11, %v372_v18  ;;  %601 = vmatmul.msk.f32.gmra.mxu1 %vm398_vm11, %v372_v18 }
 0x15d   : > { %603 = vmatmul.msk.f32.vlgmr.msra.gmra.mxu0 %vm398_vm11, %v370_v9  ;;  %v396_v41 = vpop.permute.xlu1 %395 }
 0x163   : > { %606 = vmatmul.msk.f32.gmra.mxu2 %vm398_vm11, %v373_v22  ;;  %602 = vmatmul.msk.f32.gmra.mxu1 %vm398_vm11, %v373_v22 }
 0x1c6   : > { %v428_v24 = vpop.f32.mrf.mxu0 }
 0x1c7   : > { %v429_v25 = vadd.f32 %v428_v24, %v381_v23 }
 0x1c9   : > { %498 = vst [vmem:[%s937_s30] sm:$0xff] %v429_v25 }
 0x1cc   : > { %v431_v27 = vpop.f32.mrf.mxu3 }
 0x1cd   : > { %v432_v28 = vadd.f32 %v431_v27, %v386_v26 }
 0x1cf   : > { %502 = vst [vmem:[%s937_s30 + $0x18] sm:$0xff] %v432_v28 }
 0x1d0   : > { %v460_v29 = vpop.f32.mrf.mxu1 }
 0x1d1   : > { %v461_v30 = vadd.f32 %v460_v29, %v386_v26 }
 0x1d2   : > { %v457_v31 = vpop.f32.mrf.mxu0 }
 0x1d3   : > { %503 = vst [vmem:[%s937_s30 + $0x20] sm:$0xff] %v461_v30  ;;  %v458_v33 = vadd.f32 %v457_v31, %v381_v23 }
 0x1d4   : > { %v434_v34 = vpop.f32.mrf.mxu3 }
 0x1d5   : > { %499 = vst [vmem:[%s937_s30 + $0x8] sm:$0xff] %v458_v33  ;;  %v435_v35 = vadd.f32 %v434_v34, %v391_v32 }
 0x1d6   : > { %v489_v36 = vpop.f32.mrf.mxu2 }
 0x1d7   : > { %v490_v37 = vadd.f32 %v489_v36, %v386_v26  ;;  %505 = vst [vmem:[%s937_s30 + $0x30] sm:$0xff] %v435_v35 }
 0x1d8   : > { %v463_v38 = vpop.f32.mrf.mxu1 }
 0x1d9   : > { %504 = vst.msk [vmem:[%s937_s30 + $0x28] sm:$0xff] %vm500_vm12, %v490_v37  ;;  %v464_v39 = vadd.f32 %v463_v38, %v391_v32 }
 0x1da   : > { %v486_v40 = vpop.f32.mrf.mxu0 }
 0x1db   : > { %506 = vst [vmem:[%s937_s30 + $0x38] sm:$0xff] %v464_v39  ;;  %v487_v42 = vadd.f32 %v486_v40, %v381_v23 }
 0x1dc   : > { %v437_v43 = vpop.f32.mrf.mxu3 }
 0x1dd   : > { %501 = vst.msk [vmem:[%s937_s30 + $0x10] sm:$0xff] %vm500_vm12, %v487_v42  ;;  %v438_v44 = vadd.f32 %v437_v43, %v396_v41 }
 0x1de   : > { %v492_v45 = vpop.f32.mrf.mxu2 }
 0x1df   : > { %v493_v46 = vadd.f32 %v492_v45, %v391_v32  ;;  %508 = vst [vmem:[%s937_s30 + $0x48] sm:$0xff] %v438_v44 }
 0x1e0   : > { %v466_v47 = vpop.f32.mrf.mxu1 }
 0x1e1   : > { %507 = vst.msk [vmem:[%s937_s30 + $0x40] sm:$0xff] %vm500_vm12, %v493_v46  ;;  %v467_v48 = vadd.f32 %v466_v47, %v396_v41 }
 0x1e3   : > { %509 = vst [vmem:[%s937_s30 + $0x50] sm:$0xff] %v467_v48 }
 0x1e6   : > { %v495_v49 = vpop.f32.mrf.mxu2 }
 0x1e7   : > { %v496_v50 = vadd.f32 %v495_v49, %v396_v41 }
 0x1e9   : > { %510 = vst.msk [vmem:[%s937_s30 + $0x58] sm:$0xff] %vm500_vm12, %v496_v50 }
 0x1ea   : > { %726 = shalt.err (!%p723_p3)
}
 0x1eb   : > { %s784_s26 = smov 384   ;;  %s785_s27 = smov 24  }
 0x1ec   : > { %619 = dma.vmem_to_hbm [thread:$0]  (%p844_p5), %s525_s8, 1536, %s527_s16, %s512_s9, %s784_s26, %s784_s26, %s785_s27  }
 0x1ed PF: > { %p625_p4 = scmp.ge.s32.totalorder %s761_s15, 2  ;;  %s541_s28 = sand.u32 1, %s749_s12  }
 0x1ee   : > { %s542_s29 = scalar_lea.sflag [#allocation4], %s541_s28 }
 0x1ef   : > { %p622_p7 = pnand %p625_p4, %p848_p6 }
 0x1f1   : > { %p623_p8 = pneg %p622_p7 }
 0x1f3   : > { %744 = dma.done.wait (%p623_p8), %s542_s29, 1536  }
 0x1f4   : > { %746 = vsyncadd (%p623_p8), %s542_s29, 4294965760  ;;  %p13_p9 = scmp.ge.s32.totalorder %s831_s18, 4   ;;  %s995_s12 = smov %s753_s13 }
 0x1f5   : > { %s996_s13 = smov %s757_s14  ;;  %s997_s14 = smov %s842_s21 }
 0x1f6   : > { %s998_s15 = smov %s831_s18  ;;  %15 = sbr.rel (!%p13_p9) target bundleno = 3 (0x3), region = 73 }
 0x1fb   :  { %548 = vsyncpa [#allocation4], 1 }
 0x1fc   :  { %550 = vsyncpa [#allocation4 + $0x1], 1 }

</bundles_post_ra>
